<compile_context>
chip_gen: v7x
topology: tpu7x:2x2x1
jax: 0.10.0
libtpu: 0.0.40
codegen_flags: <defaults>
</compile_context>

<pallas_src>
import numpy as np
import jax
import jax.numpy as jnp
from jax.experimental import pallas as pl
from jax.experimental.pallas import tpu as pltpu

COEF = 1.0
LAMBDA_U = 0.01


# ----------------------------------------------------------------------------
# Gaussian kernels.  The torch module's 2D kernel is exactly separable:
# g2d = outer(g1, g1) with g1 the normalized 1D Gaussian.
# ----------------------------------------------------------------------------
def _gaussian_kernel_1d(kernel_size=3, sigma=2.0):
    coords = np.arange(kernel_size).astype(np.float64)
    mean = (kernel_size - 1) / 2.0
    g = np.exp(-((coords - mean) ** 2) / (2.0 * sigma ** 2))
    g = g / g.sum()
    return g.astype(np.float32)  # (3,)


def _gaussian_kernel_2d(kernel_size=3, sigma=2.0):
    # Reference path only: matches the torch __init__ construction exactly.
    coords = np.arange(kernel_size)
    x_grid = np.tile(coords, kernel_size).reshape(kernel_size, kernel_size)
    x_grid = x_grid.astype(np.float64)
    y_grid = x_grid.T
    mean = (kernel_size - 1) / 2.0
    variance = sigma ** 2.0
    g = (1.0 / (2.0 * 3.141592654 * variance)) * np.exp(
        -((x_grid - mean) ** 2 + (y_grid - mean) ** 2) / (2.0 * variance))
    g = g / g.sum()
    return g.astype(np.float32)  # (3, 3)


# ----------------------------------------------------------------------------
# Wrapper-side layout helper: flatten -> pad -> (rows, 128), rows % 8 == 0 so
# every section of the concatenated slab is sublane-aligned.
# ----------------------------------------------------------------------------
def _lane_dense(x, pad_value=0.0):
    flat = x.reshape(-1)
    n = int(flat.shape[0])
    rows = max(1, -(-n // 128))
    rows = -(-rows // 8) * 8
    n_pad = rows * 128
    if n_pad != n:
        flat = jnp.pad(flat, (0, n_pad - n), constant_values=pad_value)
    return flat.reshape(rows, 128), n, rows


# ----------------------------------------------------------------------------
# Fused kernel: all five per-ray losses + the dS image term, single invocation
# ----------------------------------------------------------------------------
def _make_fused_kernel(g1, offs, counts, B, H, W):
    w0, w1, w2 = float(g1[0]), float(g1[1]), float(g1[2])
    o_rc, o_rf, o_tgt, o_bb, o_sg, o_bd, o_end = offs
    n_ray, n_sig, n_bdc = counts
    inv_ray = 1.0 / float(n_ray)       # = 1 / (N_rays * 3)
    inv_sig = 1.0 / float(n_sig)
    inv_bdc = 1.0 / float(n_bdc)
    inv_pix = 1.0 / float(B * H * W)

    def kernel(slab_ref, img_ref, out_ref):
        # -------- per-ray losses from the single lane-dense slab ------------
        slab = slab_ref[...].astype(jnp.float32)
        rc = slab[o_rc:o_rf]
        rf = slab[o_rf:o_tgt]
        tgt = slab[o_tgt:o_bb]
        bb = slab[o_bb:o_sg]           # beta per channel, pad = 1
        sg = slab[o_sg:o_bd]
        bd = slab[o_bd:o_end]

        out_ref[0, 0] = COEF * (0.5 * inv_ray) * jnp.sum((rc - tgt) ** 2)
        out_ref[0, 1] = COEF * inv_ray * jnp.sum(
            (rf - tgt) ** 2 * pl.reciprocal(2.0 * bb * bb))
        out_ref[0, 2] = COEF * (3.0 + inv_ray * jnp.sum(jnp.log(bb)))
        out_ref[0, 3] = COEF * (LAMBDA_U * inv_sig) * jnp.sum(sg)
        out_ref[0, 4] = COEF * (0.5 * inv_bdc) * jnp.sum(bd)

        # -------- dS: separable depthwise 3x3 Gaussian on (B,4,H+2,W+2) -----
        img = img_ref[...].astype(jnp.float32)          # channels: R,G,B,depth
        # horizontal 1x3 pass (includes halo rows, which are zero)
        h = (w0 * img[:, :, :, 0:W]
             + w1 * img[:, :, :, 1:W + 1]
             + w2 * img[:, :, :, 2:W + 2])              # (B, 4, H+2, W)
        # vertical 3x1 pass
        conv = (w0 * h[:, :, 0:H, :]
                + w1 * h[:, :, 1:H + 1, :]
                + w2 * h[:, :, 2:H + 2, :])             # (B, 4, H, W)
        center = img[:, :, 1:1 + H, 1:1 + W]            # un-padded image
        d = jnp.abs(conv - center)                      # (B, 4, H, W)
        color_term = jnp.exp(-(d[:, 0] + d[:, 1] + d[:, 2]))   # (B, H, W)
        depth_term = d[:, 3]                                     # (B, H, W)
        out_ref[0, 5] = COEF * 0.1 * inv_pix * jnp.sum(color_term * depth_term)

    return kernel


# ----------------------------------------------------------------------------
# Wrapper (layout plumbing only)
# ----------------------------------------------------------------------------
def nerfw_loss(inputs, targets):
    # --- one lane-dense slab holding all per-ray tensors ---------------------
    rc, n_ray, r_rc = _lane_dense(inputs['rgb_coarse'])
    rf, _, r_rf = _lane_dense(inputs['rgb_fine'])
    tgt, _, r_tgt = _lane_dense(targets)

    beta = inputs['beta'].reshape(-1)
    n_rays = beta.shape[0]
    n_ch = inputs['rgb_coarse'].shape[-1]
    betab, _, r_bb = _lane_dense(
        jnp.broadcast_to(beta[:, None], (n_rays, n_ch)), pad_value=1.0)

    sig, n_sig, r_sg = _lane_dense(inputs['transient_sigmas'])
    bdc, n_bdc, r_bd = _lane_dense(inputs['bdc'])

    slab = jnp.concatenate([rc, rf, tgt, betab, sig, bdc], axis=0)
    offs = np.cumsum([0, r_rc, r_rf, r_tgt, r_bb, r_sg, r_bd]).tolist()

    # --- one padded 4-channel image tensor (RGB + depth stacked) -------------
    rgb_img = inputs['_rgb_fine_static']     # (B, 3, H, W)
    dep_img = inputs['depth_fine_static']    # (B, 1, H, W)
    B, _, H, W = rgb_img.shape
    img = jnp.concatenate([rgb_img, dep_img], axis=1)        # (B, 4, H, W)
    img_pad = jnp.pad(img, ((0, 0), (0, 0), (1, 1), (1, 1)))  # 3x3 'SAME' halo

    g1 = _gaussian_kernel_1d(3, 2.0)
    kernel = _make_fused_kernel(g1, offs, (n_ray, n_sig, n_bdc), B, H, W)

    vmem = pltpu.MemorySpace.VMEM
    smem = pltpu.MemorySpace.SMEM

    out = pl.pallas_call(
        kernel,
        out_shape=jax.ShapeDtypeStruct((1, 6), jnp.float32),
        in_specs=[pl.BlockSpec(memory_space=vmem),
                  pl.BlockSpec(memory_space=vmem)],
        out_specs=pl.BlockSpec(memory_space=smem),
    )(slab, img_pad)

    row = out[0]
    return {
        'c_l': row[0],
        'f_l': row[1],
        'b_l': row[2],
        's_l': row[3],
        'bdc': row[4],
        'dS': row[5],
    }


# ----------------------------------------------------------------------------
# Pure-JAX reference (independent conv path via lax.conv) for verification
# ----------------------------------------------------------------------------
def _reference_loss(inputs, targets):
    ret = {}
    ret['c_l'] = 0.5 * jnp.mean((inputs['rgb_coarse'] - targets) ** 2)
    beta = inputs['beta']
    ret['f_l'] = jnp.mean((inputs['rgb_fine'] - targets) ** 2 / (2.0 * beta[:, None] ** 2))
    ret['b_l'] = 3.0 + jnp.mean(jnp.log(beta))
    ret['s_l'] = LAMBDA_U * jnp.mean(inputs['transient_sigmas'])
    ret['bdc'] = 0.5 * jnp.mean(inputs['bdc'])

    gk = jnp.asarray(_gaussian_kernel_2d(3, 2.0))
    rgb = inputs['_rgb_fine_static']
    dep = inputs['depth_fine_static']
    w_c = jnp.broadcast_to(gk, (3, 1, 3, 3))  # OIHW, groups=3
    w_d = jnp.broadcast_to(gk, (1, 1, 3, 3))  # OIHW, groups=1
    conv_rgb = jax.lax.conv_general_dilated(
        rgb, w_c, (1, 1), 'SAME',
        dimension_numbers=('NCHW', 'OIHW', 'NCHW'), feature_group_count=3)
    conv_dep = jax.lax.conv_general_dilated(
        dep, w_d, (1, 1), 'SAME',
        dimension_numbers=('NCHW', 'OIHW', 'NCHW'), feature_group_count=1)
    color_term = jnp.exp(-jnp.sum(jnp.abs(conv_rgb - rgb), axis=1))
    depth_term = jnp.abs(conv_dep - dep)[:, 0]
    ret['dS'] = 0.1 * jnp.mean(color_term * depth_term)

    return {k: COEF * v for k, v in ret.items()}


if __name__ == "__main__":
    key = jax.random.PRNGKey(0)
    ks = jax.random.split(key, 8)
    N, S = 128, 8
    B, H, W = 2, 16, 16

    inputs = {
        'rgb_coarse': jax.random.uniform(ks[0], (N, 3), jnp.float32),
        'rgb_fine': jax.random.uniform(ks[1], (N, 3), jnp.float32),
        'beta': jax.random.uniform(ks[2], (N,), jnp.float32, minval=0.1, maxval=1.0),
        'transient_sigmas': jax.random.uniform(ks[3], (N, S), jnp.float32),
        'bdc': jax.random.uniform(ks[4], (N,), jnp.float32),
        '_rgb_fine_static': jax.random.uniform(ks[5], (B, 3, H, W), jnp.float32),
        'depth_fine_static': jax.random.uniform(ks[6], (B, 1, H, W), jnp.float32),
    }
    targets = jax.random.uniform(ks[7], (N, 3), jnp.float32)

    out = nerfw_loss(inputs, targets)
    out = jax.tree_util.tree_map(jax.block_until_ready, out)

    ref = _reference_loss(inputs, targets)
    for k in ('c_l', 'f_l', 'b_l', 's_l', 'bdc', 'dS'):
        np.testing.assert_allclose(np.asarray(out[k]), np.asarray(ref[k]),
                                   rtol=1e-4, atol=1e-5, err_msg=k)

    print("KERNEL_OK")
</pallas_src>

<mosaic_0001>
module attributes {stable_mosaic.version = 11 : i64} {
  func.func @kernel(%arg0: memref<48x128xf32, #tpu.memory_space<vmem>>, %arg1: memref<2x4x18x18xf32, #tpu.memory_space<vmem>>, %arg2: memref<1x6xf32, #tpu.memory_space<smem>>) attributes {dimension_semantics = [], scalar_prefetch = 0 : i64, scratch_operands = 0 : i64, tpu.core_type = #tpu.core_type<tc>} {
    %c0 = arith.constant 0 : index
    %c0_0 = arith.constant 0 : index
    %0 = vector.load %arg0[%c0, %c0_0] : memref<48x128xf32, #tpu.memory_space<vmem>>, vector<48x128xf32>
    %1 = vector.extract_strided_slice %0 {offsets = [0, 0], sizes = [8, 128], strides = [1, 1]} : vector<48x128xf32> to vector<8x128xf32>
    %2 = vector.extract_strided_slice %0 {offsets = [8, 0], sizes = [8, 128], strides = [1, 1]} : vector<48x128xf32> to vector<8x128xf32>
    %3 = vector.extract_strided_slice %0 {offsets = [16, 0], sizes = [8, 128], strides = [1, 1]} : vector<48x128xf32> to vector<8x128xf32>
    %4 = vector.extract_strided_slice %0 {offsets = [24, 0], sizes = [8, 128], strides = [1, 1]} : vector<48x128xf32> to vector<8x128xf32>
    %5 = vector.extract_strided_slice %0 {offsets = [32, 0], sizes = [8, 128], strides = [1, 1]} : vector<48x128xf32> to vector<8x128xf32>
    %6 = vector.extract_strided_slice %0 {offsets = [40, 0], sizes = [8, 128], strides = [1, 1]} : vector<48x128xf32> to vector<8x128xf32>
    %7 = arith.subf %1, %3 : vector<8x128xf32>
    %8 = arith.mulf %7, %7 : vector<8x128xf32>
    %9 = vector.shape_cast %8 : vector<8x128xf32> to vector<1x8x128xf32>
    %cst = arith.constant dense<0.000000e+00> : vector<1xf32>
    %10 = vector.multi_reduction <add>, %9, %cst [1, 2] : vector<1x8x128xf32> to vector<1xf32>
    %11 = vector.shape_cast %10 : vector<1xf32> to vector<1x1x1xf32>
    %12 = vector.extract %11[0, 0, 0] : f32 from vector<1x1x1xf32>
    %cst_1 = arith.constant 0.00130208337 : f32
    %13 = arith.mulf %cst_1, %12 : f32
    %c0_2 = arith.constant 0 : index
    %c0_3 = arith.constant 0 : index
    %14 = memref.load %arg2[%c0_2, %c0_3] : memref<1x6xf32, #tpu.memory_space<smem>>
    memref.store %13, %arg2[%c0_2, %c0_3] : memref<1x6xf32, #tpu.memory_space<smem>>
    %15 = arith.subf %2, %3 : vector<8x128xf32>
    %16 = arith.mulf %15, %15 : vector<8x128xf32>
    %cst_4 = arith.constant 2.000000e+00 : f32
    %17 = vector.broadcast %cst_4 : f32 to vector<8x128xf32>
    %18 = arith.mulf %17, %4 : vector<8x128xf32>
    %19 = arith.mulf %18, %4 : vector<8x128xf32>
    %20 = tpu.reciprocal %19 : vector<8x128xf32> -> vector<8x128xf32>
    %21 = arith.mulf %16, %20 : vector<8x128xf32>
    %22 = vector.shape_cast %21 : vector<8x128xf32> to vector<1x8x128xf32>
    %cst_5 = arith.constant dense<0.000000e+00> : vector<1xf32>
    %23 = vector.multi_reduction <add>, %22, %cst_5 [1, 2] : vector<1x8x128xf32> to vector<1xf32>
    %24 = vector.shape_cast %23 : vector<1xf32> to vector<1x1x1xf32>
    %25 = vector.extract %24[0, 0, 0] : f32 from vector<1x1x1xf32>
    %cst_6 = arith.constant 0.00260416674 : f32
    %26 = arith.mulf %cst_6, %25 : f32
    %c0_7 = arith.constant 0 : index
    %c1 = arith.constant 1 : index
    %27 = memref.load %arg2[%c0_7, %c1] : memref<1x6xf32, #tpu.memory_space<smem>>
    memref.store %26, %arg2[%c0_7, %c1] : memref<1x6xf32, #tpu.memory_space<smem>>
    %28 = math.log %4 : vector<8x128xf32>
    %29 = vector.shape_cast %28 : vector<8x128xf32> to vector<1x8x128xf32>
    %cst_8 = arith.constant dense<0.000000e+00> : vector<1xf32>
    %30 = vector.multi_reduction <add>, %29, %cst_8 [1, 2] : vector<1x8x128xf32> to vector<1xf32>
    %31 = vector.shape_cast %30 : vector<1xf32> to vector<1x1x1xf32>
    %32 = vector.extract %31[0, 0, 0] : f32 from vector<1x1x1xf32>
    %cst_9 = arith.constant 0.00260416674 : f32
    %33 = arith.mulf %cst_9, %32 : f32
    %cst_10 = arith.constant 3.000000e+00 : f32
    %34 = arith.addf %cst_10, %33 : f32
    %cst_11 = arith.constant 1.000000e+00 : f32
    %35 = arith.mulf %cst_11, %34 : f32
    %c0_12 = arith.constant 0 : index
    %c2 = arith.constant 2 : index
    %36 = memref.load %arg2[%c0_12, %c2] : memref<1x6xf32, #tpu.memory_space<smem>>
    memref.store %35, %arg2[%c0_12, %c2] : memref<1x6xf32, #tpu.memory_space<smem>>
    %37 = vector.shape_cast %5 : vector<8x128xf32> to vector<1x8x128xf32>
    %cst_13 = arith.constant dense<0.000000e+00> : vector<1xf32>
    %38 = vector.multi_reduction <add>, %37, %cst_13 [1, 2] : vector<1x8x128xf32> to vector<1xf32>
    %39 = vector.shape_cast %38 : vector<1xf32> to vector<1x1x1xf32>
    %40 = vector.extract %39[0, 0, 0] : f32 from vector<1x1x1xf32>
    %cst_14 = arith.constant 9.76562478E-6 : f32
    %41 = arith.mulf %cst_14, %40 : f32
    %c0_15 = arith.constant 0 : index
    %c3 = arith.constant 3 : index
    %42 = memref.load %arg2[%c0_15, %c3] : memref<1x6xf32, #tpu.memory_space<smem>>
    memref.store %41, %arg2[%c0_15, %c3] : memref<1x6xf32, #tpu.memory_space<smem>>
    %43 = vector.shape_cast %6 : vector<8x128xf32> to vector<1x8x128xf32>
    %cst_16 = arith.constant dense<0.000000e+00> : vector<1xf32>
    %44 = vector.multi_reduction <add>, %43, %cst_16 [1, 2] : vector<1x8x128xf32> to vector<1xf32>
    %45 = vector.shape_cast %44 : vector<1xf32> to vector<1x1x1xf32>
    %46 = vector.extract %45[0, 0, 0] : f32 from vector<1x1x1xf32>
    %cst_17 = arith.constant 3.906250e-03 : f32
    %47 = arith.mulf %cst_17, %46 : f32
    %c0_18 = arith.constant 0 : index
    %c4 = arith.constant 4 : index
    %48 = memref.load %arg2[%c0_18, %c4] : memref<1x6xf32, #tpu.memory_space<smem>>
    memref.store %47, %arg2[%c0_18, %c4] : memref<1x6xf32, #tpu.memory_space<smem>>
    %c0_19 = arith.constant 0 : index
    %c0_20 = arith.constant 0 : index
    %c0_21 = arith.constant 0 : index
    %c0_22 = arith.constant 0 : index
    %49 = vector.load %arg1[%c0_19, %c0_20, %c0_21, %c0_22] : memref<2x4x18x18xf32, #tpu.memory_space<vmem>>, vector<2x4x18x18xf32>
    %50 = vector.extract_strided_slice %49 {offsets = [0, 0, 0, 0], sizes = [2, 4, 18, 16], strides = [1, 1, 1, 1]} : vector<2x4x18x18xf32> to vector<2x4x18x16xf32>
    %cst_23 = arith.constant 0.319167763 : f32
    %51 = vector.broadcast %cst_23 : f32 to vector<2x4x18x16xf32>
    %52 = arith.mulf %51, %50 : vector<2x4x18x16xf32>
    %53 = vector.extract_strided_slice %49 {offsets = [0, 0, 0, 1], sizes = [2, 4, 18, 16], strides = [1, 1, 1, 1]} : vector<2x4x18x18xf32> to vector<2x4x18x16xf32>
    %cst_24 = arith.constant 0.361664474 : f32
    %54 = vector.broadcast %cst_24 : f32 to vector<2x4x18x16xf32>
    %55 = arith.mulf %54, %53 : vector<2x4x18x16xf32>
    %56 = arith.addf %52, %55 : vector<2x4x18x16xf32>
    %57 = vector.extract_strided_slice %49 {offsets = [0, 0, 0, 2], sizes = [2, 4, 18, 16], strides = [1, 1, 1, 1]} : vector<2x4x18x18xf32> to vector<2x4x18x16xf32>
    %cst_25 = arith.constant 0.319167763 : f32
    %58 = vector.broadcast %cst_25 : f32 to vector<2x4x18x16xf32>
    %59 = arith.mulf %58, %57 : vector<2x4x18x16xf32>
    %60 = arith.addf %56, %59 : vector<2x4x18x16xf32>
    %61 = vector.extract_strided_slice %60 {offsets = [0, 0, 0, 0], sizes = [2, 4, 16, 16], strides = [1, 1, 1, 1]} : vector<2x4x18x16xf32> to vector<2x4x16x16xf32>
    %cst_26 = arith.constant 0.319167763 : f32
    %62 = vector.broadcast %cst_26 : f32 to vector<2x4x16x16xf32>
    %63 = arith.mulf %62, %61 : vector<2x4x16x16xf32>
    %64 = vector.extract_strided_slice %60 {offsets = [0, 0, 1, 0], sizes = [2, 4, 16, 16], strides = [1, 1, 1, 1]} : vector<2x4x18x16xf32> to vector<2x4x16x16xf32>
    %cst_27 = arith.constant 0.361664474 : f32
    %65 = vector.broadcast %cst_27 : f32 to vector<2x4x16x16xf32>
    %66 = arith.mulf %65, %64 : vector<2x4x16x16xf32>
    %67 = arith.addf %63, %66 : vector<2x4x16x16xf32>
    %68 = vector.extract_strided_slice %60 {offsets = [0, 0, 2, 0], sizes = [2, 4, 16, 16], strides = [1, 1, 1, 1]} : vector<2x4x18x16xf32> to vector<2x4x16x16xf32>
    %cst_28 = arith.constant 0.319167763 : f32
    %69 = vector.broadcast %cst_28 : f32 to vector<2x4x16x16xf32>
    %70 = arith.mulf %69, %68 : vector<2x4x16x16xf32>
    %71 = arith.addf %67, %70 : vector<2x4x16x16xf32>
    %72 = vector.extract_strided_slice %49 {offsets = [0, 0, 1, 1], sizes = [2, 4, 16, 16], strides = [1, 1, 1, 1]} : vector<2x4x18x18xf32> to vector<2x4x16x16xf32>
    %73 = arith.subf %71, %72 : vector<2x4x16x16xf32>
    %74 = math.absf %73 : vector<2x4x16x16xf32>
    %75 = vector.extract_strided_slice %74 {offsets = [0, 0, 0, 0], sizes = [2, 1, 16, 16], strides = [1, 1, 1, 1]} : vector<2x4x16x16xf32> to vector<2x1x16x16xf32>
    %76 = vector.shape_cast %75 : vector<2x1x16x16xf32> to vector<2x16x16xf32>
    %77 = vector.extract_strided_slice %74 {offsets = [0, 1, 0, 0], sizes = [2, 1, 16, 16], strides = [1, 1, 1, 1]} : vector<2x4x16x16xf32> to vector<2x1x16x16xf32>
    %78 = vector.shape_cast %77 : vector<2x1x16x16xf32> to vector<2x16x16xf32>
    %79 = arith.addf %76, %78 : vector<2x16x16xf32>
    %80 = vector.extract_strided_slice %74 {offsets = [0, 2, 0, 0], sizes = [2, 1, 16, 16], strides = [1, 1, 1, 1]} : vector<2x4x16x16xf32> to vector<2x1x16x16xf32>
    %81 = vector.shape_cast %80 : vector<2x1x16x16xf32> to vector<2x16x16xf32>
    %82 = arith.addf %79, %81 : vector<2x16x16xf32>
    %cst_29 = arith.constant 0.000000e+00 : f32
    %83 = vector.broadcast %cst_29 : f32 to vector<2x16x16xf32>
    %84 = arith.subf %83, %82 : vector<2x16x16xf32>
    %85 = math.exp %84 : vector<2x16x16xf32>
    %86 = vector.extract_strided_slice %74 {offsets = [0, 3, 0, 0], sizes = [2, 1, 16, 16], strides = [1, 1, 1, 1]} : vector<2x4x16x16xf32> to vector<2x1x16x16xf32>
    %87 = vector.shape_cast %86 : vector<2x1x16x16xf32> to vector<2x16x16xf32>
    %88 = arith.mulf %85, %87 : vector<2x16x16xf32>
    %89 = vector.shape_cast %88 : vector<2x16x16xf32> to vector<1x2x16x16xf32>
    %cst_30 = arith.constant dense<0.000000e+00> : vector<1xf32>
    %90 = vector.multi_reduction <add>, %89, %cst_30 [1, 2, 3] : vector<1x2x16x16xf32> to vector<1xf32>
    %91 = vector.shape_cast %90 : vector<1xf32> to vector<1x1x1x1xf32>
    %92 = vector.extract %91[0, 0, 0, 0] : f32 from vector<1x1x1x1xf32>
    %cst_31 = arith.constant 1.95312503E-4 : f32
    %93 = arith.mulf %cst_31, %92 : f32
    %c0_32 = arith.constant 0 : index
    %c5 = arith.constant 5 : index
    %94 = memref.load %arg2[%c0_32, %c5] : memref<1x6xf32, #tpu.memory_space<smem>>
    memref.store %93, %arg2[%c0_32, %c5] : memref<1x6xf32, #tpu.memory_space<smem>>
    return
  }
}

</mosaic_0001>

<bundles_post_ra>
// kernel: tpu_custom_call.1
= control target key start
LH: loop header
LB: loop body
LE: loop exit
PB: predicated region body
PF: predicated region fallthrough
CT: control target
= control target key end

     0   :  { %s883_s17 = smov 127   ;;  %vm465_vm0 = vcmask 1046528   ;;  %s1346_s0 = inlined_call_operand.vmem [shape: f32[48,128], index: 0, kind: input, shape index: {}]   ;;  %s1347_s1 = inlined_call_operand.vmem [shape: f32[2,4,18,18], index: 1, kind: input, shape index: {}]   ;;  %s1348_s2 = inlined_call_operand.hbm [shape: f32[1,6], index: 2, kind: output, shape index: {}]  }
   0x1   :  { %v91_v0 = vld [vmem:[%s1347_s1 + $0x10] sm:$0x3]  ;;  %v89_v1 = vld [vmem:[%s1347_s1] sm:$0xff]  ;;  %v92_v2 = vld [vmem:[%s1347_s1 + $0x18] sm:$0xff] }
   0x2   :  { %v139_v3 = vmul.f32 0.36166447, %v91_v0  ;;  %v137_v4 = vmul.f32 0.36166447, %v89_v1  ;;  %v90_v5 = vld [vmem:[%s1347_s1 + $0x8] sm:$0xff]  ;;  %v93_v9 = vld [vmem:[%s1347_s1 + $0x20] sm:$0xff] }
   0x3   :  { %v140_v6 = vmul.f32 0.36166447, %v92_v2  ;;  %v138_v7 = vmul.f32 0.36166447, %v90_v5  ;;  %v94_v8 = vld [vmem:[%s1347_s1 + $0x28] sm:$0x3] }
   0x4   :  { %189 = vrot.lane.b32.xlu1 %v139_v3, %s883_s17  ;;  %185 = vrot.lane.b32.xlu0 %v137_v4, %s883_s17  ;;  %v142_v10 = vmul.f32 0.36166447, %v94_v8  ;;  %v141_v11 = vmul.f32 0.36166447, %v93_v9  ;;  %v926_v12 = vld [vmem:[%s1347_s1 + $0x38] sm:$0xff]  ;;  %v95_v13 = vld [vmem:[%s1347_s1 + $0x30] sm:$0xff] }
   0x5   :  { %v667_v14 = vrot.slane %v89_v1, 1  ;;  %v670_v15 = vrot.slane %v91_v0, 1  ;;  %v144_v16 = vmul.f32 0.36166447, %v926_v12  ;;  %v143_v17 = vmul.f32 0.36166447, %v95_v13 }
   0x6   :  { %v668_v18 = vrot.slane %v90_v5, 1  ;;  %v937_v19 = vld [vmem:[%s1347_s1 + $0x60] sm:$0xff]  ;;  %v957_v25 = vld [vmem:[%s1347_s1 + $0x78] sm:$0xff]  ;;  %v962_v26 = vld [vmem:[%s1347_s1 + $0x68] sm:$0xff]  ;;  %v672_v27 = vrot.slane %v92_v2, 1  ;;  %v673_v28 = vrot.slane %v93_v9, 1 }
   0x7   :  { %v942_v20 = vld [vmem:[%s1347_s1 + $0x40] sm:$0x3]  ;;  %v149_v23 = vmul.f32 0.36166447, %v937_v19  ;;  %v675_v29 = vrot.slane %v94_v8, 1  ;;  %v677_v30 = vrot.slane %v95_v13, 1 }
   0x8   :  { %191 = vrot.lane.b32.xlu1 %v140_v6, %s883_s17  ;;  %187 = vrot.lane.b32.xlu0 %v138_v7, %s883_s17  ;;  %v945_v21 = vsel %vm465_vm0, %v667_v14, %v668_v18  ;;  %v948_v22 = vsel %vm465_vm0, %v668_v18, %v670_v15  ;;  %v145_v24 = vmul.f32 0.36166447, %v942_v20  ;;  %v678_v31 = vrot.slane %v926_v12, 1  ;;  %v978_v36 = vld [vmem:[%s1347_s1 + $0x80] sm:$0xff] }
   0x9   :  { %v152_v32 = vmul.f32 0.36166447, %v957_v25  ;;  %v150_v33 = vmul.f32 0.36166447, %v962_v26  ;;  %v970_v34 = vsel %vm465_vm0, %v672_v27, %v673_v28  ;;  %v973_v35 = vsel %vm465_vm0, %v673_v28, %v675_v29 }
   0xa   :  { %v983_v37 = vsel %vm465_vm0, %v677_v30, %v678_v31 }
   0xc   :  { %195 = vrot.lane.b32.xlu1 %v142_v10, %s883_s17  ;;  %193 = vrot.lane.b32.xlu0 %v141_v11, %s883_s17 }
  0x10   :  { %199 = vrot.lane.b32.xlu1 %v144_v16, %s883_s17  ;;  %197 = vrot.lane.b32.xlu0 %v143_v17, %s883_s17 }
  0x14   :  { %209 = vrot.lane.b32.xlu1 %v149_v23, %s883_s17  ;;  %201 = vrot.lane.b32.xlu0 %v145_v24, %s883_s17 }
  0x15   :  { %7 = vsyncpa [#allocation3], 0  ;;  %v153_v38 = vmul.f32 0.36166447, %v978_v36  ;;  %v988_v39 = vmul.f32 0.31916776, %v89_v1 }
  0x16   :  { %s884_s8 = smov 126   ;;  %v993_v40 = vmul.f32 0.31916776, %v90_v5  ;;  %v995_v41 = vmul.f32 0.31916776, %v91_v0  ;;  %v1023_v48 = vld [vmem:[%s1347_s1 + $0x90] sm:$0xff] }
  0x17   :  { %v1001_v42 = vmul.f32 0.31916776, %v92_v2  ;;  %v1003_v43 = vmul.f32 0.31916776, %v93_v9  ;;  %v1008_v44 = vld [vmem:[%s1347_s1 + $0x70] sm:$0x3] }
  0x18   :  { %215 = vrot.lane.b32.xlu1 %v152_v32, %s883_s17  ;;  %211 = vrot.lane.b32.xlu0 %v150_v33, %s883_s17  ;;  %v1014_v45 = vmul.f32 0.31916776, %v94_v8  ;;  %v151_v46 = vmul.f32 0.36166447, %v1008_v44  ;;  %v106_v47 = vld [vmem:[%s1347_s1 + $0x88] sm:$0x3] }
  0x19   :  { %v154_v49 = vmul.f32 0.36166447, %v106_v47  ;;  %v155_v50 = vmul.f32 0.36166447, %v1023_v48  ;;  %v1032_v51 = vld [vmem:[%s1347_s1 + $0x98] sm:$0xff]  ;;  %v680_v3 = vrot.slane %v942_v20, 1 }
  0x1a   :  { %v156_v52 = vmul.f32 0.36166447, %v1032_v51  ;;  %v1037_v53 = vmul.f32 0.31916776, %v95_v13  ;;  %v1043_v54 = vmul.f32 0.31916776, %v926_v12 }
  0x1b   :  { %v1046_v55 = vmul.f32 0.31916776, %v942_v20  ;;  %v1053_v56 = vmul.f32 0.31916776, %v937_v19  ;;  %v1056_v57 = vmul.f32 0.31916776, %v962_v26  ;;  %v681_v5 = vsel %vm465_vm0, %v678_v31, %v680_v3 }
  0x1c   :  { %217 = vrot.lane.b32.xlu0 %v153_v38, %s883_s17  ;;  %305 = vrot.lane.b32.xlu1 %v988_v39, %s884_s8  ;;  %v1063_v58 = vmul.f32 0.31916776, %v957_v25  ;;  %v1066_v59 = vmul.f32 0.31916776, %v978_v36  ;;  %v109_v60 = vld [vmem:[%s1347_s1 + $0xa0] sm:$0x3] }
  0x1d   :  { %v157_v61 = vmul.f32 0.36166447, %v109_v60  ;;  %v1076_v62 = vmul.f32 0.31916776, %v1008_v44  ;;  %v1081_v63 = vmul.f32 0.31916776, %v106_v47 }
  0x1e   :  { %v1084_v0 = vmul.f32 0.31916776, %v1023_v48  ;;  %v1091_v1 = vmul.f32 0.31916776, %v1032_v51  ;;  %v1093_v2 = vmul.f32 0.31916776, %v109_v60 }
  0x1f   :  { %v687_v4 = vrot.slane %v937_v19, 1  ;;  %v688_v6 = vrot.slane %v962_v26, 1  ;;  %v692_v7 = vrot.slane %v957_v25, 1  ;;  %v693_v8 = vrot.slane %v978_v36, 1  ;;  %v98_v17 = vld [vmem:[%s1347_s1 + $0x48] sm:$0xff]  ;;  %v99_v20 = vld [vmem:[%s1347_s1 + $0x50] sm:$0xff] }
  0x20   :  { %307 = vrot.lane.b32.xlu0 %v993_v40, %s884_s8  ;;  %309 = vrot.lane.b32.xlu1 %v995_v41, %s884_s8  ;;  %v690_v11 = vrot.slane %v1008_v44, 1  ;;  %v695_v12 = vrot.slane %v106_v47, 1  ;;  %v697_v15 = vrot.slane %v1023_v48, 1  ;;  %v698_v16 = vrot.slane %v1032_v51, 1  ;;  %v110_v25 = vld [vmem:[%s1347_s1 + $0xa8] sm:$0xff]  ;;  %v111_v28 = vld [vmem:[%s1347_s1 + $0xb0] sm:$0xff] }
  0x21   :  { %v689_v9 = vsel %vm465_vm0, %v687_v4, %v688_v6  ;;  %v694_v10 = vsel %vm465_vm0, %v692_v7, %v693_v8  ;;  %v146_v18 = vmul.f32 0.36166447, %v98_v17  ;;  %v700_v24 = vrot.slane %v109_v60, 1  ;;  %v112_v33 = vld [vmem:[%s1347_s1 + $0xb8] sm:$0x3]  ;;  %s871_s29 = scalar_lea.hbm %s1348_s2, 16 }
  0x22   :  { %v691_v13 = vsel %vm465_vm0, %v688_v6, %v690_v11  ;;  %v696_v14 = vsel %vm465_vm0, %v693_v8, %v695_v12  ;;  %v699_v19 = vsel %vm465_vm0, %v697_v15, %v698_v16  ;;  %v158_v26 = vmul.f32 0.36166447, %v110_v25  ;;  %v15_v12 = vld [vmem:[%s1346_s0 + $0x18] sm:$0xff]  ;;  %p872_p0 = scmp.ne.s32.totalorder %s1348_s2, %s871_s29  ;;  %p875_p1 = scmp.lt.u32.totalorder %s871_s29, %s1348_s2 }
  0x23   :  { %v701_v27 = vsel %vm465_vm0, %v698_v16, %v700_v24  ;;  %v159_v29 = vmul.f32 0.36166447, %v111_v28  ;;  %v1152_v30 = vmul.f32 0.31916776, %v98_v17  ;;  %v1157_v31 = vmul.f32 0.31916776, %v99_v20 }
  0x24   :  { %311 = vrot.lane.b32.xlu0 %v1001_v42, %s884_s8  ;;  %313 = vrot.lane.b32.xlu1 %v1003_v43, %s884_s8  ;;  %v1173_v36 = vmul.f32 0.31916776, %v111_v28  ;;  %v682_v38 = vrot.slane %v98_v17, 1  ;;  %v683_v44 = vrot.slane %v99_v20, 1  ;;  %v705_v60 = vrot.slane %v112_v33, 1  ;;  %v14_v24 = vld [vmem:[%s1346_s0 + $0x10] sm:$0xff]  ;;  %p877_p2 = pnand %p875_p1, %p872_p0 }
  0x25   :  { %v34_v15 = vmul.f32 2.0, %v15_v12  ;;  %859 = vlog2.f32 %v15_v12  ;;  %vm570_vm1 = vcmask 1045504   ;;  %vm811_vm2 = vcmask 130048  }
  0x28   :  { %315 = vrot.lane.b32.xlu0 %v1014_v45, %s884_s8  ;;  %213 = vrot.lane.b32.xlu1 %v151_v46, %s883_s17 }
  0x2c   :  { %219 = vrot.lane.b32.xlu0 %v154_v49, %s883_s17  ;;  %221 = vrot.lane.b32.xlu1 %v155_v50, %s883_s17  ;;  %v702_v49 = vrot.slane %v110_v25, 1  ;;  %v684_v50 = vsel %vm465_vm0, %v682_v38, %v683_v44 }
  0x30   :  { %223 = vrot.lane.b32.xlu0 %v156_v52, %s883_s17  ;;  %317 = vrot.lane.b32.xlu1 %v1037_v53, %s884_s8  ;;  %v703_v52 = vrot.slane %v111_v28, 1 }
  0x32   :  { %v704_v4 = vsel %vm465_vm0, %v702_v49, %v703_v52 }
  0x34   :  { %319 = vrot.lane.b32.xlu0 %v1043_v54, %s884_s8  ;;  %321 = vrot.lane.b32.xlu1 %v1046_v55, %s884_s8 }
  0x38   :  { %329 = vrot.lane.b32.xlu0 %v1053_v56, %s884_s8  ;;  %331 = vrot.lane.b32.xlu1 %v1056_v57, %s884_s8 }
  0x3c   :  { %335 = vrot.lane.b32.xlu0 %v1063_v58, %s884_s8  ;;  %337 = vrot.lane.b32.xlu1 %v1066_v59, %s884_s8 }
  0x40   :  { %225 = vrot.lane.b32.xlu0 %v157_v61, %s883_s17  ;;  %333 = vrot.lane.b32.xlu1 %v1076_v62, %s884_s8 }
  0x44   :  { %339 = vrot.lane.b32.xlu0 %v1081_v63, %s884_s8  ;;  %341 = vrot.lane.b32.xlu1 %v1084_v0, %s884_s8 }
  0x48   :  { %343 = vrot.lane.b32.xlu0 %v1091_v1, %s884_s8  ;;  %345 = vrot.lane.b32.xlu1 %v1093_v2, %s884_s8 }
  0x4c   :  { %707 = vrot.lane.b32.xlu0 %v945_v21, %s883_s17  ;;  %709 = vrot.lane.b32.xlu1 %v948_v22, %s883_s17  ;;  %v100_v21 = vld [vmem:[%s1347_s1 + $0x58] sm:$0x3]  ;;  %v147_v22 = vmul.f32 0.36166447, %v99_v20  ;;  %v35_v20 = vmul.f32 %v34_v15, %v15_v12 }
  0x4d   :  { %v148_v23 = vmul.f32 0.36166447, %v100_v21  ;;  %v1159_v32 = vmul.f32 0.31916776, %v100_v21  ;;  %v685_v46 = vrot.slane %v100_v21, 1 }
  0x4e   :  { %861 = vrcp.f32 %v35_v20 }
  0x4f   :  { %v686_v51 = vsel %vm465_vm0, %v683_v44, %v685_v46 }
  0x50   :  { %711 = vrot.lane.b32.xlu0 %v970_v34, %s883_s17  ;;  %713 = vrot.lane.b32.xlu1 %v973_v35, %s883_s17  ;;  %v160_v34 = vmul.f32 0.36166447, %v112_v33  ;;  %v1168_v35 = vmul.f32 0.31916776, %v110_v25 }
  0x54   :  { %715 = vrot.lane.b32.xlu0 %v983_v37, %s883_s17  ;;  %717 = vrot.lane.b32.xlu1 %v681_v5, %s883_s17  ;;  %v1175_v37 = vmul.f32 0.31916776, %v112_v33  ;;  %v706_v5 = vsel %vm465_vm0, %v703_v52, %v705_v60 }
  0x58   :  { %723 = vrot.lane.b32.xlu0 %v689_v9, %s883_s17  ;;  %727 = vrot.lane.b32.xlu1 %v694_v10, %s883_s17 }
  0x5c   :  { %725 = vrot.lane.b32.xlu0 %v691_v13, %s883_s17  ;;  %729 = vrot.lane.b32.xlu1 %v696_v14, %s883_s17 }
  0x60   :  { %731 = vrot.lane.b32.xlu0 %v699_v19, %s883_s17  ;;  %203 = vrot.lane.b32.xlu1 %v146_v18, %s883_s17 }
  0x64   :  { %205 = vrot.lane.b32.xlu0 %v147_v22, %s883_s17  ;;  %207 = vrot.lane.b32.xlu1 %v148_v23, %s883_s17  ;;  %v12_v23 = vld [vmem:[%s1346_s0] sm:$0xff] }
  0x68   :  { %733 = vrot.lane.b32.xlu0 %v701_v27, %s883_s17  ;;  %227 = vrot.lane.b32.xlu1 %v158_v26, %s883_s17 }
  0x6c   :  { %229 = vrot.lane.b32.xlu0 %v159_v29, %s883_s17  ;;  %323 = vrot.lane.b32.xlu1 %v1152_v30, %s884_s8 }
  0x70   :  { %325 = vrot.lane.b32.xlu0 %v1157_v31, %s884_s8  ;;  %327 = vrot.lane.b32.xlu1 %v1159_v32, %s884_s8 }
  0x74   :  { %231 = vrot.lane.b32.xlu0 %v160_v34, %s883_s17  ;;  %347 = vrot.lane.b32.xlu1 %v1168_v35, %s884_s8 }
  0x76   :  { %v190_v47 = vpop.permute.xlu1 %189  ;;  %v186_v48 = vpop.permute.xlu0 %185 }
  0x77   :  { %v257_v16 = vadd.f32 %v186_v48, %v988_v39  ;;  %v259_v21 = vadd.f32 %v190_v47, %v995_v41  ;;  %v13_v39 = vld [vmem:[%s1346_s0 + $0x8] sm:$0xff] }
  0x78   :  { %349 = vrot.lane.b32.xlu0 %v1173_v36, %s884_s8  ;;  %351 = vrot.lane.b32.xlu1 %v1175_v37, %s884_s8  ;;  %v32_v33 = vsub.f32 %v13_v39, %v14_v24 }
  0x7a   :  { %v192_v61 = vpop.permute.xlu1 %191  ;;  %v188_v3 = vpop.permute.xlu0 %187 }
  0x7b   :  { %v258_v22 = vadd.f32 %v188_v3, %v993_v40  ;;  %v18_v40 = vsub.f32 %v12_v23, %v14_v24  ;;  %v260_v34 = vadd.f32 %v192_v61, %v1001_v42 }
  0x7c   :  { %719 = vrot.lane.b32.xlu0 %v684_v50, %s883_s17  ;;  %721 = vrot.lane.b32.xlu1 %v686_v51, %s883_s17 }
  0x7e   :  { %v196_v6 = vpop.permute.xlu1 %195  ;;  %v194_v7 = vpop.permute.xlu0 %193 }
  0x7f   :  { %v261_v47 = vadd.f32 %v194_v7, %v1003_v43  ;;  %v262_v12 = vadd.f32 %v196_v6, %v1014_v45  ;;  %v33_v6 = vmul.f32 %v32_v33, %v32_v33 }
  0x80   :  { %735 = vrot.lane.b32.xlu0 %v704_v4, %s883_s17  ;;  %737 = vrot.lane.b32.xlu1 %v706_v5, %s883_s17 }
  0x82   :  { %v1189_v8 = vpop.permute.xlu1 %199  ;;  %v1191_v9 = vpop.permute.xlu0 %197 }
  0x86   :  { %v1193_v10 = vpop.permute.xlu1 %209  ;;  %v1195_v11 = vpop.permute.xlu0 %201 }
  0x8a   :  { %v1200_v13 = vpop.permute.xlu1 %215  ;;  %v1202_v14 = vpop.permute.xlu0 %211 }
  0x8e   :  { %v1205_v17 = vpop.permute.xlu0 %217  ;;  %v306_v18 = vpop.permute.xlu1 %305 }
  0x8f   :  { %v377_v19 = vadd.f32 %v306_v18, %v257_v16  ;;  %v19_v18 = vmul.f32 %v18_v40, %v18_v40 }
  0x91   :  { %v401_v25 = vmul.f32 0.31916776, %v377_v19  ;;  %v417_v26 = vmul.f32 0.36166447, %v377_v19 }
  0x92   :  { %v308_v27 = vpop.permute.xlu0 %307  ;;  %v310_v28 = vpop.permute.xlu1 %309 }
  0x93   :  { %v378_v41 = vadd.f32 %v308_v27, %v258_v22  ;;  %v379_v29 = vadd.f32 %v310_v28, %v259_v21  ;;  %v466_v48 = vrot.slane %v417_v26, 1  ;;  %v571_v49 = vrot.slane %v401_v25, 2  ;;  %v860_v27 = vpop.eup %859 }
  0x95   :  { %v402_v38 = vmul.f32 0.31916776, %v378_v41  ;;  %v418_v44 = vmul.f32 0.36166447, %v378_v41  ;;  %v419_v46 = vmul.f32 0.36166447, %v379_v29 }
  0x96   :  { %v538_v50 = vmul.f32 0.31916776, %v379_v29  ;;  %v312_v51 = vpop.permute.xlu0 %311  ;;  %v314_v52 = vpop.permute.xlu1 %313 }
  0x97   :  { %v467_v60 = vrot.slane %v418_v44, 1  ;;  %v572_v3 = vrot.slane %v402_v38, 2  ;;  %v469_v4 = vrot.slane %v419_v46, 1  ;;  %v380_v5 = vadd.f32 %v312_v51, %v260_v34  ;;  %v862_v34 = vpop.eup %861 }
  0x98   :  { %v574_v15 = vrot.slane %v538_v50, 2  ;;  %v381_v16 = vadd.f32 %v314_v52, %v261_v47 }
  0x99   :  { %v403_v42 = vmul.f32 0.31916776, %v380_v5  ;;  %v420_v61 = vmul.f32 0.36166447, %v380_v5  ;;  %v468_v19 = vsel %vm465_vm0, %v466_v48, %v467_v60  ;;  %v573_v43 = vsel %vm570_vm1, %v571_v49, %v572_v3 }
  0x9a   :  { %v404_v7 = vmul.f32 0.31916776, %v381_v16  ;;  %v421_v20 = vmul.f32 0.36166447, %v381_v16  ;;  %v316_v21 = vpop.permute.xlu0 %315  ;;  %v1223_v22 = vpop.permute.xlu1 %213  ;;  %v522_v23 = vadd.f32 %v468_v19, %v401_v25  ;;  %v470_v24 = vsel %vm465_vm0, %v467_v60, %v469_v4 }
  0x9b   :  { %v471_v39 = vrot.slane %v420_v61, 1  ;;  %v576_v26 = vrot.slane %v403_v42, 2  ;;  %v382_v45 = vadd.f32 %v316_v21, %v262_v12  ;;  %v523_v40 = vadd.f32 %v470_v24, %v402_v38 }
  0x9c   :  { %v472_v28 = vrot.slane %v421_v20, 1  ;;  %v577_v41 = vrot.slane %v404_v7, 2  ;;  %v1226_v29 = vadd.f32 %v573_v43, %v522_v23  ;;  %v575_v47 = vsel %vm570_vm1, %v572_v3, %v574_v15 }
  0x9d   :  { %v422_v44 = vmul.f32 0.36166447, %v382_v45  ;;  %v539_v46 = vmul.f32 0.31916776, %v382_v45  ;;  %v1233_v49 = vadd.f32 %v575_v47, %v523_v40  ;;  %v51_v60 = vmul.f32 0.6931472, %v860_v27 }
  0x9e   :  { %v1229_v48 = vpop.permute.xlu0 %219  ;;  %v1231_v25 = vpop.permute.xlu1 %221  ;;  %v473_v50 = vsel %vm465_vm0, %v471_v39, %v472_v28  ;;  %v578_v33 = vsel %vm570_vm1, %v576_v26, %v577_v41  ;;  %v37_v4 = vmul.f32 %v862_v34, %v33_v6  ;;  %v263_v5 = vadd.f32 %v1191_v9, %v1037_v53 }
  0x9f   :  { %v474_v51 = vrot.slane %v422_v44, 1  ;;  %v579_v52 = vrot.slane %v539_v46, 2  ;;  %20 = vadd.xlane.f32.xlu0 %v19_v18  ;;  %v524_v38 = vadd.f32 %v473_v50, %v403_v42  ;;  %v16_v18 = vld [vmem:[%s1346_s0 + $0x20] sm:$0xff]  ;;  %v264_v53 = vadd.f32 %v1189_v8, %v1043_v54  ;;  %v17_v42 = vld [vmem:[%s1346_s0 + $0x28] sm:$0xff] }
  0xa0   :  { %v265_v9 = vadd.f32 %v1195_v11, %v1046_v55  ;;  %v269_v45 = vadd.f32 %v1193_v10, %v1053_v56  ;;  %v270_v55 = vadd.f32 %v1202_v14, %v1056_v57  ;;  %v272_v50 = vadd.f32 %v1200_v13, %v1063_v58 }
  0xa1   :  { %v475_v3 = vsel %vm465_vm0, %v472_v28, %v474_v51  ;;  %v580_v12 = vsel %vm570_vm1, %v577_v41, %v579_v52  ;;  %v1243_v61 = vadd.f32 %v578_v33, %v524_v38  ;;  %v273_v56 = vadd.f32 %v1205_v17, %v1066_v59 }
  0xa2   :  { %v1241_v15 = vpop.permute.xlu0 %223  ;;  %v318_v16 = vpop.permute.xlu1 %317  ;;  %v525_v19 = vadd.f32 %v475_v3, %v404_v7 }
  0xa3   :  { %v383_v43 = vadd.f32 %v318_v16, %v263_v5  ;;  %52 = vadd.xlane.f32.xlu0 %v51_v60 }
  0xa4   :  { %v1245_v20 = vadd.f32 %v580_v12, %v525_v19  ;;  %38 = vadd.xlane.f32.xlu1 %v37_v4 }
  0xa5   :  { %v405_v7 = vmul.f32 0.31916776, %v383_v43  ;;  %v423_v21 = vmul.f32 0.36166447, %v383_v43 }
  0xa6   :  { %v320_v23 = vpop.permute.xlu0 %319  ;;  %v322_v24 = vpop.permute.xlu1 %321 }
  0xa7   :  { %v384_v39 = vadd.f32 %v320_v23, %v264_v53  ;;  %v385_v26 = vadd.f32 %v322_v24, %v265_v9  ;;  %65 = vadd.xlane.f32.xlu0 %v16_v18  ;;  %v476_v11 = vrot.slane %v423_v21, 1  ;;  %v581_v27 = vrot.slane %v405_v7, 2 }
  0xa8   :  { %77 = vadd.xlane.f32.xlu1 %v17_v42 }
  0xa9   :  { %v406_v6 = vmul.f32 0.31916776, %v384_v39  ;;  %v424_v54 = vmul.f32 0.36166447, %v384_v39  ;;  %v425_v8 = vmul.f32 0.36166447, %v385_v26 }
  0xaa   :  { %v540_v28 = vmul.f32 0.31916776, %v385_v26  ;;  %v330_v41 = vpop.permute.xlu0 %329  ;;  %v332_v40 = vpop.permute.xlu1 %331 }
  0xab   :  { %v477_v34 = vrot.slane %v424_v54, 1  ;;  %v582_v44 = vrot.slane %v406_v6, 2  ;;  %v479_v46 = vrot.slane %v425_v8, 1  ;;  %v389_v47 = vadd.f32 %v330_v41, %v269_v45 }
  0xac   :  { %v584_v10 = vrot.slane %v540_v28, 2  ;;  %v390_v33 = vadd.f32 %v332_v40, %v270_v55 }
  0xad   :  { %v409_v51 = vmul.f32 0.31916776, %v389_v47  ;;  %v429_v52 = vmul.f32 0.36166447, %v389_v47  ;;  %v478_v57 = vsel %vm465_vm0, %v476_v11, %v477_v34  ;;  %v583_v14 = vsel %vm570_vm1, %v581_v27, %v582_v44 }
  0xae   :  { %v1267_v60 = vmul.f32 0.31916776, %v390_v33  ;;  %v1269_v38 = vmul.f32 0.36166447, %v390_v33  ;;  %v336_v4 = vpop.permute.xlu0 %335  ;;  %v338_v5 = vpop.permute.xlu1 %337  ;;  %v526_v3 = vadd.f32 %v478_v57, %v405_v7  ;;  %v480_v58 = vsel %vm465_vm0, %v477_v34, %v479_v46 }
  0xaf   :  { %v486_v13 = vrot.slane %v429_v52, 1  ;;  %v591_v12 = vrot.slane %v409_v51, 2  ;;  %v392_v59 = vadd.f32 %v336_v4, %v272_v50  ;;  %v393_v17 = vadd.f32 %v338_v5, %v273_v56 }
  0xb0   :  { %v487_v16 = vrot.slane %v1269_v38, 1  ;;  %v592_v19 = vrot.slane %v1267_v60, 2  ;;  %v1274_v43 = vadd.f32 %v583_v14, %v526_v3  ;;  %v527_v18 = vadd.f32 %v480_v58, %v406_v6 }
  0xb1   :  { %v411_v53 = vmul.f32 0.31916776, %v392_v59  ;;  %v432_v9 = vmul.f32 0.36166447, %v392_v59  ;;  %v1276_v42 = vmul.f32 0.31916776, %v393_v17  ;;  %v585_v21 = vsel %vm570_vm1, %v582_v44, %v584_v10 }
  0xb2   :  { %v433_v7 = vmul.f32 0.36166447, %v393_v17  ;;  %v226_v23 = vpop.permute.xlu0 %225  ;;  %v334_v24 = vpop.permute.xlu1 %333  ;;  %v632_v39 = vadd.f32 %v585_v21, %v527_v18  ;;  %v488_v26 = vsel %vm465_vm0, %v486_v13, %v487_v16  ;;  %v593_v45 = vsel %vm570_vm1, %v591_v12, %v592_v19 }
  0xb3   :  { %v491_v54 = vrot.slane %v432_v9, 1  ;;  %v596_v8 = vrot.slane %v411_v53, 2  ;;  %v597_v6 = vrot.slane %v1276_v42, 2  ;;  %v530_v11 = vadd.f32 %v488_v26, %v409_v51 }
  0xb4   :  { %v492_v55 = vrot.slane %v433_v7, 1  ;;  %v271_v46 = vadd.f32 %v1223_v22, %v1076_v62  ;;  %v274_v47 = vadd.f32 %v1229_v48, %v1081_v63  ;;  %v276_v4 = vadd.f32 %v1241_v15, %v1091_v1 }
  0xb5   :  { %v598_v27 = vsel %vm570_vm1, %v596_v8, %v597_v6  ;;  %v635_v40 = vadd.f32 %v593_v45, %v530_v11  ;;  %v275_v62 = vadd.f32 %v1231_v25, %v1084_v0  ;;  %v277_v12 = vadd.f32 %v226_v23, %v1093_v2 }
  0xb6   :  { %v340_v28 = vpop.permute.xlu0 %339  ;;  %v342_v41 = vpop.permute.xlu1 %341  ;;  %v493_v34 = vsel %vm465_vm0, %v491_v54, %v492_v55  ;;  %v391_v56 = vadd.f32 %v334_v24, %v271_v46 }
  0xb7   :  { %v532_v44 = vadd.f32 %v493_v34, %v411_v53  ;;  %v394_v10 = vadd.f32 %v340_v28, %v274_v47  ;;  %v395_v15 = vadd.f32 %v342_v41, %v275_v62 }
  0xb8   :  { %v431_v52 = vmul.f32 0.36166447, %v391_v56  ;;  %v542_v18 = vmul.f32 0.31916776, %v391_v56 }
  0xb9   :  { %v637_v50 = vadd.f32 %v598_v27, %v532_v44  ;;  %v434_v57 = vmul.f32 0.36166447, %v394_v10  ;;  %v543_v1 = vmul.f32 0.31916776, %v394_v10  ;;  %v435_v54 = vmul.f32 0.36166447, %v395_v15 }
  0xba   :  { %v344_v33 = vpop.permute.xlu0 %343  ;;  %v346_v51 = vpop.permute.xlu1 %345  ;;  %v489_v63 = vrot.slane %v431_v52, 1  ;;  %v594_v45 = vrot.slane %v542_v18, 2  ;;  %v413_v62 = vmul.f32 0.31916776, %v395_v15 }
  0xbb   :  { %v494_v22 = vrot.slane %v434_v57, 1  ;;  %v396_v48 = vadd.f32 %v344_v33, %v276_v4  ;;  %v397_v0 = vadd.f32 %v346_v51, %v277_v12  ;;  %v599_v8 = vrot.slane %v543_v1, 2 }
  0xbc   :  { %v490_v24 = vsel %vm465_vm0, %v487_v16, %v489_v63  ;;  %v496_v33 = vrot.slane %v435_v54, 1 }
  0xbd   :  { %v436_v21 = vmul.f32 0.36166447, %v396_v48  ;;  %v495_v26 = vsel %vm465_vm0, %v492_v55, %v494_v22  ;;  %v531_v28 = vadd.f32 %v490_v24, %v1267_v60  ;;  %v437_v34 = vmul.f32 0.36166447, %v397_v0 }
  0xbe   :  { %v708_v14 = vpop.permute.xlu0 %707  ;;  %v710_v38 = vpop.permute.xlu1 %709  ;;  %v533_v16 = vadd.f32 %v495_v26, %v1276_v42  ;;  %v544_v22 = vmul.f32 0.31916776, %v397_v0 }
  0xbf   :  { %v755_v5 = vsub.f32 %v1226_v29, %v708_v14  ;;  %v756_v3 = vsub.f32 %v1233_v49, %v710_v38  ;;  %v497_v41 = vrot.slane %v436_v21, 1  ;;  %v600_v14 = vsel %vm570_vm1, %v597_v6, %v599_v8 }
  0xc0   :  { %v499_v38 = vrot.slane %v437_v34, 1  ;;  %v601_v6 = vrot.slane %v413_v62, 2 }
  0xc1   :  { %v771_v29 = vand.u32 2147483647, %v755_v5  ;;  %v772_v53 = vand.u32 2147483647, %v756_v3  ;;  %v638_v5 = vadd.f32 %v600_v14, %v533_v16  ;;  %v498_v63 = vsel %vm465_vm0, %v496_v33, %v497_v41 }
  0xc2   :  { %v712_v58 = vpop.permute.xlu0 %711  ;;  %v714_v13 = vpop.permute.xlu1 %713  ;;  %v534_v12 = vadd.f32 %v498_v63, %v413_v62  ;;  %v500_v42 = vsel %vm465_vm0, %v497_v41, %v499_v38 }
  0xc3   :  { %v757_v59 = vsub.f32 %v1243_v61, %v712_v58  ;;  %v758_v17 = vsub.f32 %v1245_v20, %v714_v13 }
  0xc5   :  { %v773_v49 = vand.u32 2147483647, %v757_v59  ;;  %v774_v9 = vand.u32 2147483647, %v758_v17  ;;  %v604_v17 = vrot.slane %v544_v22, 2 }
  0xc6   :  { %v716_v25 = vpop.permute.xlu0 %715  ;;  %v718_v7 = vpop.permute.xlu1 %717 }
  0xc7   :  { %v787_v2 = vadd.f32 %v773_v49, %v771_v29  ;;  %v788_v23 = vadd.f32 %v774_v9, %v772_v53  ;;  %v759_v61 = vsub.f32 %v1274_v43, %v716_v25  ;;  %v760_v20 = vsub.f32 %v632_v39, %v718_v7 }
  0xc8   :  { %v414_v43 = vmul.f32 0.31916776, %v396_v48  ;;  %v595_v39 = vsel %vm570_vm1, %v592_v19, %v594_v45 }
  0xc9   :  { %v775_v11 = vand.u32 2147483647, %v759_v61  ;;  %v776_v27 = vand.u32 2147483647, %v760_v20  ;;  %v636_v57 = vadd.f32 %v595_v39, %v531_v28 }
  0xca   :  { %v724_v44 = vpop.permute.xlu0 %723  ;;  %v728_v46 = vpop.permute.xlu1 %727  ;;  %v602_v48 = vrot.slane %v414_v43, 2  ;;  %v535_v15 = vadd.f32 %v500_v42, %v414_v43 }
  0xcb   :  { %v791_v47 = vadd.f32 %v787_v2, %v775_v11  ;;  %v792_v55 = vadd.f32 %v788_v23, %v776_v27  ;;  %v763_v56 = vsub.f32 %v635_v40, %v724_v44  ;;  %v765_v10 = vsub.f32 %v637_v50, %v728_v46 }
  0xcc   :  { %v603_v1 = vsel %vm570_vm1, %v601_v6, %v602_v48  ;;  %v605_v21 = vsel %vm570_vm1, %v602_v48, %v604_v17 }
  0xcd   :  { %v779_v51 = vand.u32 2147483647, %v763_v56  ;;  %v781_v52 = vand.u32 2147483647, %v765_v10  ;;  %v639_v29 = vadd.f32 %v603_v1, %v534_v12  ;;  %v640_v0 = vadd.f32 %v605_v21, %v535_v15 }
  0xce   :  { %v726_v4 = vpop.permute.xlu0 %725  ;;  %v730_v3 = vpop.permute.xlu1 %729  ;;  %v795_v23 = vsub.f32 0.0, %v791_v47  ;;  %v796_v8 = vsub.f32 0.0, %v792_v55 }
  0xcf   :  { %v789_v40 = vadd.f32 %v781_v52, %v779_v51  ;;  %v764_v50 = vsub.f32 %v636_v57, %v726_v4  ;;  %v766_v60 = vsub.f32 %v638_v5, %v730_v3 }
  0xd0   :  { %v799_v28 = vmul.f32 1.442695, %v795_v23  ;;  %v801_v10 = vmul.f32 1.442695, %v796_v8 }
  0xd1   :  { %v780_v19 = vand.u32 2147483647, %v764_v50  ;;  %v782_v58 = vand.u32 2147483647, %v766_v60 }
  0xd2   :  { %v732_v13 = vpop.permute.xlu0 %731  ;;  %v204_v59 = vpop.permute.xlu1 %203  ;;  %863 = vpow2.f32 %v799_v28 }
  0xd3   :  { %v790_v18 = vadd.f32 %v782_v58, %v780_v19  ;;  %v767_v9 = vsub.f32 %v639_v29, %v732_v13  ;;  %v266_v2 = vadd.f32 %v204_v59, %v1152_v30  ;;  %865 = vpow2.f32 %v801_v10 }
  0xd5   :  { %v783_v26 = vand.u32 2147483647, %v767_v9 }
  0xd6   :  { %v206_v53 = vpop.permute.xlu0 %205  ;;  %v208_v49 = vpop.permute.xlu1 %207 }
  0xd7   :  { %v793_v11 = vadd.f32 %v789_v40, %v783_v26  ;;  %v267_v27 = vadd.f32 %v206_v53, %v1157_v31  ;;  %v268_v41 = vadd.f32 %v208_v49, %v1159_v32 }
  0xd9   :  { %v797_v33 = vsub.f32 0.0, %v793_v11 }
  0xda   :  { %v734_v25 = vpop.permute.xlu0 %733  ;;  %v228_v7 = vpop.permute.xlu1 %227 }
  0xdb   :  { %v768_v24 = vsub.f32 %v640_v0, %v734_v25  ;;  %v278_v47 = vadd.f32 %v228_v7, %v1168_v35  ;;  %v803_v3 = vmul.f32 1.442695, %v797_v33 }
  0xdd   :  { %v784_v61 = vand.u32 2147483647, %v768_v24  ;;  %867 = vpow2.f32 %v803_v3 }
  0xde   :  { %v230_v20 = vpop.permute.xlu0 %229  ;;  %v324_v45 = vpop.permute.xlu1 %323 }
  0xdf   :  { %v386_v54 = vadd.f32 %v324_v45, %v266_v2  ;;  %v794_v34 = vadd.f32 %v790_v18, %v784_v61  ;;  %v279_v62 = vadd.f32 %v230_v20, %v1173_v36  ;;  %v864_v2 = vpop.eup %863 }
  0xe0   :  { %v866_v11 = vpop.eup %865 }
  0xe1   :  { %v426_v16 = vmul.f32 0.36166447, %v386_v54  ;;  %v407_v43 = vmul.f32 0.31916776, %v386_v54  ;;  %v798_v55 = vsub.f32 0.0, %v794_v34 }
  0xe2   :  { %v326_v44 = vpop.permute.xlu0 %325  ;;  %v328_v46 = vpop.permute.xlu1 %327 }
  0xe3   :  { %v387_v56 = vadd.f32 %v326_v44, %v267_v27  ;;  %v388_v30 = vadd.f32 %v328_v46, %v268_v41  ;;  %v481_v32 = vrot.slane %v426_v16, 1  ;;  %v586_v50 = vrot.slane %v407_v43, 2 }
  0xe4   :  { %v805_v60 = vmul.f32 1.442695, %v798_v55 }
  0xe5   :  { %v408_v39 = vmul.f32 0.31916776, %v387_v56  ;;  %v427_v51 = vmul.f32 0.36166447, %v387_v56  ;;  %v428_v52 = vmul.f32 0.36166447, %v388_v30 }
  0xe6   :  { %v541_v31 = vmul.f32 0.31916776, %v388_v30  ;;  %v232_v57 = vpop.permute.xlu0 %231  ;;  %v348_v14 = vpop.permute.xlu1 %347  ;;  %869 = vpow2.f32 %v805_v60 }
  0xe7   :  { %v482_v38 = vrot.slane %v427_v51, 1  ;;  %v587_v4 = vrot.slane %v408_v39, 2  ;;  %v398_v5 = vadd.f32 %v348_v14, %v278_v47  ;;  %v484_v40 = vrot.slane %v428_v52, 1 }
  0xe8   :  { %v589_v35 = vrot.slane %v541_v31, 2  ;;  %v280_v63 = vadd.f32 %v232_v57, %v1175_v37 }
  0xe9   :  { %v483_v22 = vsel %vm465_vm0, %v481_v32, %v482_v38  ;;  %v438_v48 = vmul.f32 0.36166447, %v398_v5  ;;  %v485_v12 = vsel %vm465_vm0, %v482_v38, %v484_v40  ;;  %v588_v6 = vsel %vm570_vm1, %v586_v50, %v587_v4 }
  0xea   :  { %v350_v19 = vpop.permute.xlu0 %349  ;;  %v352_v58 = vpop.permute.xlu1 %351  ;;  %v528_v13 = vadd.f32 %v483_v22, %v407_v43  ;;  %v415_v36 = vmul.f32 0.31916776, %v398_v5  ;;  %v529_v18 = vadd.f32 %v485_v12, %v408_v39  ;;  %v590_v29 = vsel %vm570_vm1, %v587_v4, %v589_v35 }
  0xeb   :  { %v399_v59 = vadd.f32 %v350_v19, %v279_v62  ;;  %v400_v42 = vadd.f32 %v352_v58, %v280_v63  ;;  %v501_v53 = vrot.slane %v438_v48, 1  ;;  %v868_v43 = vpop.eup %867 }
  0xec   :  { %v633_v17 = vadd.f32 %v588_v6, %v528_v13  ;;  %v634_v21 = vadd.f32 %v590_v29, %v529_v18  ;;  %v606_v20 = vrot.slane %v415_v36, 2 }
  0xed   :  { %v416_v1 = vmul.f32 0.31916776, %v399_v59  ;;  %v439_v15 = vmul.f32 0.36166447, %v399_v59  ;;  %v440_v37 = vmul.f32 0.36166447, %v400_v42 }
  0xee   :  { %v545_v49 = vmul.f32 0.31916776, %v400_v42  ;;  %v720_v9 = vpop.permute.xlu0 %719  ;;  %v722_v0 = vpop.permute.xlu1 %721 }
  0xef   :  { %v502_v25 = vrot.slane %v439_v15, 1  ;;  %v607_v7 = vrot.slane %v416_v1, 2  ;;  %v504_v24 = vrot.slane %v440_v37, 1  ;;  %v761_v26 = vsub.f32 %v633_v17, %v720_v9 }
  0xf0   :  { %v609_v23 = vrot.slane %v545_v49, 2  ;;  %v762_v61 = vsub.f32 %v634_v21, %v722_v0  ;;  %v870_v31 = vpop.eup %869 }
  0xf1   :  { %v777_v45 = vand.u32 2147483647, %v761_v26  ;;  %v503_v54 = vsel %vm465_vm0, %v501_v53, %v502_v25  ;;  %v505_v8 = vsel %vm465_vm0, %v502_v25, %v504_v24  ;;  %v608_v46 = vsel %vm570_vm1, %v606_v20, %v607_v7 }
  0xf2   :  { %v778_v27 = vand.u32 2147483647, %v762_v61  ;;  %v536_v28 = vadd.f32 %v503_v54, %v415_v36  ;;  %v537_v41 = vadd.f32 %v505_v8, %v416_v1  ;;  %v736_v44 = vpop.permute.xlu0 %735  ;;  %v610_v16 = vsel %vm570_vm1, %v607_v7, %v609_v23  ;;  %v738_v56 = vpop.permute.xlu1 %737 }
  0xf3   :  { %v807_v34 = vmul.f32 %v864_v2, %v777_v45 }
  0xf4   :  { %v808_v10 = vmul.f32 %v866_v11, %v778_v27  ;;  %v641_v33 = vadd.f32 %v608_v46, %v536_v28  ;;  %v642_v30 = vadd.f32 %v610_v16, %v537_v41 }
  0xf5   :  { %v812_v47 = vsel %vm811_vm2, %v807_v34, 0.0 }
  0xf6   :  { %v813_v39 = vsel %vm811_vm2, %v808_v10, 0.0  ;;  %v769_v51 = vsub.f32 %v641_v33, %v736_v44  ;;  %v770_v55 = vsub.f32 %v642_v30, %v738_v56 }
  0xf7   :  { %v814_v52 = vadd.f32 %v813_v39, %v812_v47 }
  0xf8   :  { %v785_v57 = vand.u32 2147483647, %v769_v51  ;;  %v786_v14 = vand.u32 2147483647, %v770_v55 }
  0xfa   :  { %v809_v32 = vmul.f32 %v868_v43, %v785_v57  ;;  %v810_v38 = vmul.f32 %v870_v31, %v786_v14 }
  0xfc   :  { %v815_v4 = vsel %vm811_vm2, %v809_v32, 0.0  ;;  %v817_v3 = vsel %vm811_vm2, %v810_v38, 0.0 }
  0xfd   :  { %v816_v5 = vadd.f32 %v815_v4, %v814_v52 }
  0xff   :  { %v818_v62 = vadd.f32 %v817_v3, %v816_v5 }
 0x101   :  { %819 = vadd.xlane.f32.xlu0 %v818_v62 }
 0x12c   :  { %v21_v40 = vpop.xlane.xlu0 %20 }
 0x12d   :  { %v22_v50 = vrot.slane %v21_v40, 4 }
 0x12f   :  { %v23_v35 = vadd.f32 %v22_v50, %v21_v40 }
 0x130   :  { %v53_v63 = vpop.xlane.xlu0 %52 }
 0x131   :  { %v24_v22 = vrot.slane %v23_v35, 2  ;;  %v39_v60 = vpop.xlane.xlu1 %38  ;;  %v54_v48 = vrot.slane %v53_v63, 4 }
 0x132   :  { %v40_v19 = vrot.slane %v39_v60, 4 }
 0x133   :  { %v55_v58 = vadd.f32 %v54_v48, %v53_v63  ;;  %v25_v13 = vadd.f32 %v24_v22, %v23_v35 }
 0x134   :  { %v41_v12 = vadd.f32 %v40_v19, %v39_v60  ;;  %v66_v59 = vpop.xlane.xlu0 %65 }
 0x135   :  { %v56_v42 = vrot.slane %v55_v58, 2  ;;  %v67_v6 = vrot.slane %v66_v59, 4  ;;  %v78_v36 = vpop.xlane.xlu1 %77  ;;  %v26_v17 = vrot.slane %v25_v13, 1 }
 0x136   :  { %v42_v18 = vrot.slane %v41_v12, 2  ;;  %v79_v1 = vrot.slane %v78_v36, 4 }
 0x137   :  { %v68_v15 = vadd.f32 %v67_v6, %v66_v59  ;;  %v27_v37 = vadd.f32 %v26_v17, %v25_v13  ;;  %v57_v29 = vadd.f32 %v56_v42, %v55_v58 }
 0x138   :  { %v80_v53 = vadd.f32 %v79_v1, %v78_v36  ;;  %v43_v49 = vadd.f32 %v42_v18, %v41_v12 }
 0x139   :  { %v69_v9 = vrot.slane %v68_v15, 2  ;;  %844 = vpush %v27_v37  ;;  %v58_v21 = vrot.slane %v57_v29, 1 }
 0x13a   :  { %v81_v0 = vrot.slane %v80_v53, 2  ;;  %v44_v25 = vrot.slane %v43_v49, 1 }
 0x13b   :  { %v59_v7 = vadd.f32 %v58_v21, %v57_v29  ;;  %v70_v24 = vadd.f32 %v69_v9, %v68_v15 }
 0x13c   :  { %v82_v26 = vadd.f32 %v81_v0, %v80_v53  ;;  %v45_v2 = vadd.f32 %v44_v25, %v43_v49 }
 0x13d   :  { %v71_v23 = vrot.slane %v70_v24, 1 }
 0x13e   :  { %846 = vpush %v45_v2  ;;  %v83_v61 = vrot.slane %v82_v26, 1 }
 0x13f   :  { %848 = vpush %v59_v7  ;;  %v72_v20 = vadd.f32 %v71_v23, %v70_v24 }
 0x140   :  { %v84_v45 = vadd.f32 %v83_v61, %v82_v26 }
 0x141   :  { %850 = vpush %v72_v20 }
 0x142   :  { %852 = vpush %v84_v45 }
 0x16a   :  { %s845_s0 = spop %844 }
 0x16b   :  { %s29_s14 = smul.f32 0.0013020834, %s845_s0 }
 0x16d   :  { %31 = sst [smem:[#allocation2]] %s29_s14 }
 0x16f   :  { %s847_s15 = spop %846 }
 0x170   :  { %s47_s16 = smul.f32 0.0026041667, %s847_s15  ;;  %s849_s18 = spop %848 }
 0x171   :  { %s61_s19 = smul.f32 0.0026041667, %s849_s18 }
 0x172   :  { %49 = sst [smem:[#allocation2 + $0x1]] %s47_s16  ;;  %s851_s20 = spop %850 }
 0x173   :  { %s62_s21 = sadd.f32 3.0, %s61_s19  ;;  %s74_s22 = smul.f32 9.765625e-06, %s851_s20 }
 0x174   :  { %s853_s23 = spop %852 }
 0x175   :  { %64 = sst [smem:[#allocation2 + $0x2]] %s62_s21  ;;  %s86_s24 = smul.f32 0.00390625, %s853_s23 }
 0x176   :  { %76 = sst [smem:[#allocation2 + $0x3]] %s74_s22 }
 0x177   :  { %88 = sst [smem:[#allocation2 + $0x4]] %s86_s24 }
 0x18e   :  { %v820_v54 = vpop.xlane.xlu0 %819 }
 0x18f   :  { %v821_v8 = vrot.slane %v820_v54, 4 }
 0x191   :  { %v822_v11 = vadd.f32 %v821_v8, %v820_v54 }
 0x193   :  { %v823_v27 = vrot.slane %v822_v11, 2 }
 0x195   :  { %v824_v28 = vadd.f32 %v823_v27, %v822_v11 }
 0x197   :  { %v825_v41 = vrot.slane %v824_v28, 1 }
 0x199   :  { %v826_v34 = vadd.f32 %v825_v41, %v824_v28 }
 0x19b   :  { %854 = vpush %v826_v34 }
 0x1cc   :  { %s855_s25 = spop %854 }
 0x1cd   :  { %s828_s26 = smul.f32 0.0001953125, %s855_s25 }
 0x1cf   :  { %830 = sst [smem:[#allocation2 + $0x5]] %s828_s26 }
 0x1d0   :  { %880 = shalt.err (!%p877_p2)
}
 0x1d1   :  { %s885_s17 = smov [#allocation2]  }
 0x1d2   :  { %838 = dma.smem_to_hbm %s885_s17, 16, %s1348_s2, [#allocation3]  }
 0x1d3   :  { %881 = dma.done.wait [#allocation3], 16  }
 0x1d4   :  { %882 = vsyncadd [#allocation3], 4294967280 }
 0x1d5   :  { %842 = sfence }
 0x1d6   :  { %843 = vsyncpa [#allocation3], 1 }

</bundles_post_ra>
